<compile_context>
chip_gen: v7x
topology: tpu7x:2x2x1
jax: 0.10.0
libtpu: 0.0.40
codegen_flags: <defaults>
</compile_context>

<pallas_src>
import math

import jax
import jax.numpy as jnp
from jax.experimental import pallas as pl
from jax.experimental.pallas import tpu as pltpu


# Batch rows (lanes) per grid step in the feature-major path.
# Slab VMEM cost: x (8-padded, TILE_B) f32 = 4 MiB, y = 4 MiB, double-buffered
# -> 16 MiB, comfortably inside the 32 MiB scoped-VMEM budget below on
# v5e / v6e / v7x. HBM traffic per step ~3.7 MB >> the ~0.35 us step overhead.
_TILE_B = 131072
_VMEM_LIMIT_BYTES = 32 * 1024 * 1024


def _use_vpu_path(in_dim, out_dim):
    """VPU (feature-major, scalar weights) unless both feature dims are MXU-sized."""
    return (min(in_dim, out_dim) <= 8) or (out_dim < 128)


def _make_vpu_kernel(in_dim, out_dim):
    """y_t[n, :] = b[n] + sum_k W[n, k] * x_t[k, :]   (batch on lanes)."""

    def kernel(w_ref, b_ref, xt_ref, yt_ref):
        # w_ref: SMEM (out_dim*in_dim,) f32, row-major: w_ref[n*in_dim + k] == W[n, k]
        # b_ref: SMEM (out_dim,) f32
        # xt_ref: VMEM (in_dim, tile_b) f32     yt_ref: VMEM (out_dim, tile_b)
        lanes = xt_ref.shape[-1]
        for n in range(out_dim):                      # static unroll (tiny)
            acc = jnp.full((1, lanes), b_ref[n], dtype=jnp.float32)
            for k in range(in_dim):                   # static unroll (tiny)
                acc = acc + w_ref[n * in_dim + k] * xt_ref[k:k + 1, :].astype(jnp.float32)
            yt_ref[n:n + 1, :] = acc.astype(yt_ref.dtype)

    return kernel


def linear_forward_vpu(x, w_flat, bias):
    """y = x @ W^T + b, W given row-major-flattened: w_flat[n*in_dim + k] = W[n, k]."""
    squeeze = x.ndim == 1
    if squeeze:                                       # nn.Linear also accepts 1-D input
        x = x[None, :]

    B, in_dim = x.shape
    out_dim = bias.shape[0]

    # Feature-major relayout (one-time, wrapper-side): batch on the lane axis.
    x_t = x.T                                         # (in_dim, B)

    # Whole problem in one step when it fits; otherwise MiB-scale slabs so the
    # grid has >=2 "parallel" steps (v7x megacore) and step overhead amortizes.
    tile_b = B if B <= _TILE_B else _TILE_B
    grid = (pl.cdiv(B, tile_b),)

    cost = pl.CostEstimate(
        flops=2 * B * in_dim * out_dim,
        transcendentals=0,
        bytes_accessed=4 * (B * (in_dim + out_dim) + in_dim * out_dim + out_dim),
    )

    y_t = pl.pallas_call(
        _make_vpu_kernel(in_dim, out_dim),
        out_shape=jax.ShapeDtypeStruct((out_dim, B), x.dtype),
        grid=grid,
        in_specs=[
            # Flat 1-D params in SMEM (scalar reads; dodges [8,128] padding).
            pl.BlockSpec((out_dim * in_dim,), lambda i: (0,),
                         memory_space=pltpu.MemorySpace.SMEM),
            pl.BlockSpec((out_dim,), lambda i: (0,),
                         memory_space=pltpu.MemorySpace.SMEM),
            # Lane-dense x slab (second-minor dim == full array dim).
            pl.BlockSpec((in_dim, tile_b), lambda i: (0, i)),
        ],
        out_specs=pl.BlockSpec((out_dim, tile_b), lambda i: (0, i)),
        compiler_params=pltpu.CompilerParams(
            dimension_semantics=("parallel",),
            vmem_limit_bytes=_VMEM_LIMIT_BYTES,
        ),
        cost_estimate=cost,
    )(w_flat, bias, x_t)

    y = y_t.T                                         # back to (B, out_dim)
    return y[0] if squeeze else y


def _mxu_kernel(x_ref, w_ref, b_ref, o_ref):
    o_ref[...] = (jnp.dot(x_ref[...], w_ref[...], preferred_element_type=jnp.float32)
                  + b_ref[...].astype(jnp.float32)).astype(o_ref.dtype)


def linear_forward_mxu(x, w_t, b2d, tile_b=1024):
    """Batch-major MXU fallback for large feature dims (not used for Linear(4,3))."""
    squeeze = x.ndim == 1
    if squeeze:
        x = x[None, :]
    B, in_dim = x.shape
    out_dim = w_t.shape[1]
    tb = B if B <= tile_b else tile_b
    y = pl.pallas_call(
        _mxu_kernel,
        out_shape=jax.ShapeDtypeStruct((B, out_dim), x.dtype),
        grid=(pl.cdiv(B, tb),),
        in_specs=[
            pl.BlockSpec((tb, in_dim), lambda i: (i, 0)),
            pl.BlockSpec((in_dim, out_dim), lambda i: (0, 0)),
            pl.BlockSpec((1, out_dim), lambda i: (0, 0)),
        ],
        out_specs=pl.BlockSpec((tb, out_dim), lambda i: (i, 0)),
        compiler_params=pltpu.CompilerParams(dimension_semantics=("parallel",)),
    )(x, w_t, b2d)
    return y[0] if squeeze else y


class NeuralNetworkPallas:
    """Mirror of the PyTorch module: one Linear(input_dim, output_dim)."""

    def __init__(self, input_dim, output_dim, key):
        # Deterministic init mimicking torch.nn.Linear's default
        # uniform(-1/sqrt(in_dim), 1/sqrt(in_dim)) for weight and bias.
        kw, kb = jax.random.split(key)
        bound = 1.0 / math.sqrt(input_dim)
        self.weight = jax.random.uniform(
            kw, (output_dim, input_dim), jnp.float32, -bound, bound)
        self.bias = jax.random.uniform(
            kb, (output_dim,), jnp.float32, -bound, bound)

        # Hoisted, kernel-friendly parameter layouts (no per-call reshapes).
        if _use_vpu_path(input_dim, output_dim):
            self._params = (jnp.asarray(self.weight.reshape(-1)), self.bias)
            self._forward = jax.jit(linear_forward_vpu)
        else:
            self._params = (jnp.asarray(self.weight.T),
                            self.bias.reshape(1, output_dim))
            self._forward = jax.jit(linear_forward_mxu)

    def __call__(self, x):
        return self._forward(x, *self._params)


if __name__ == "__main__":
    key = jax.random.PRNGKey(0)
    k_param, k_x, k_big = jax.random.split(key, 3)

    input_dim, output_dim, batch = 4, 3, 2
    model = NeuralNetworkPallas(input_dim, output_dim, k_param)

    # Small batched input + the original script's 1-D path (x = FloatTensor(4)).
    x_batched = jax.random.normal(k_x, (batch, input_dim), jnp.float32)
    x_1d = x_batched[0]
    # A moderately larger batch (still a single lane-dense grid step).
    x_big = jax.random.normal(k_big, (1024, input_dim), jnp.float32)

    y_batched = jax.block_until_ready(model(x_batched))
    y_1d = jax.block_until_ready(model(x_1d))
    y_big = jax.block_until_ready(model(x_big))

    # Correctness checks against plain JAX reference.
    ref = lambda a: a @ model.weight.T + model.bias
    assert y_batched.shape == (batch, output_dim)
    assert y_1d.shape == (output_dim,)
    assert y_big.shape == (1024, output_dim)
    assert jnp.allclose(y_batched, ref(x_batched), atol=1e-5)
    assert jnp.allclose(y_1d, ref(x_1d), atol=1e-5)
    assert jnp.allclose(y_big, ref(x_big), atol=1e-5)

    print("KERNEL_OK")
</pallas_src>

<mosaic_0001>
module attributes {stable_mosaic.version = 11 : i64} {
  func.func @kernel(%arg0: i32, %arg1: memref<12xf32, #tpu.memory_space<smem>>, %arg2: memref<3xf32, #tpu.memory_space<smem>>, %arg3: memref<4x2xf32, #tpu.memory_space<vmem>>, %arg4: memref<3x2xf32, #tpu.memory_space<vmem>>) attributes {dimension_semantics = [#tpu.dimension_semantics<parallel>], iteration_bounds = array<i64: 1>, scalar_prefetch = 0 : i64, scratch_operands = 0 : i64, tpu.core_type = #tpu.core_type<tc>, window_params = [{transform_indices = @transform_0, window_bounds = array<i64: 12>}, {transform_indices = @transform_1, window_bounds = array<i64: 3>}, {transform_indices = @transform_2, window_bounds = array<i64: 4, 2>}, {transform_indices = @transform_3, window_bounds = array<i64: 3, 2>}]} {
    %c0 = arith.constant 0 : index
    %0 = memref.load %arg2[%c0] : memref<3xf32, #tpu.memory_space<smem>>
    %1 = vector.broadcast %0 : f32 to vector<1x2xf32>
    %c0_0 = arith.constant 0 : index
    %2 = memref.load %arg1[%c0_0] : memref<12xf32, #tpu.memory_space<smem>>
    %c0_1 = arith.constant 0 : index
    %c0_2 = arith.constant 0 : index
    %3 = vector.load %arg3[%c0_1, %c0_2] : memref<4x2xf32, #tpu.memory_space<vmem>>, vector<1x2xf32>
    %4 = vector.broadcast %2 : f32 to vector<1x2xf32>
    %5 = arith.mulf %4, %3 : vector<1x2xf32>
    %6 = arith.addf %1, %5 : vector<1x2xf32>
    %c1 = arith.constant 1 : index
    %7 = memref.load %arg1[%c1] : memref<12xf32, #tpu.memory_space<smem>>
    %c1_3 = arith.constant 1 : index
    %c0_4 = arith.constant 0 : index
    %8 = vector.load %arg3[%c1_3, %c0_4] : memref<4x2xf32, #tpu.memory_space<vmem>>, vector<1x2xf32>
    %9 = vector.broadcast %7 : f32 to vector<1x2xf32>
    %10 = arith.mulf %9, %8 : vector<1x2xf32>
    %11 = arith.addf %6, %10 : vector<1x2xf32>
    %c2 = arith.constant 2 : index
    %12 = memref.load %arg1[%c2] : memref<12xf32, #tpu.memory_space<smem>>
    %c2_5 = arith.constant 2 : index
    %c0_6 = arith.constant 0 : index
    %13 = vector.load %arg3[%c2_5, %c0_6] : memref<4x2xf32, #tpu.memory_space<vmem>>, vector<1x2xf32>
    %14 = vector.broadcast %12 : f32 to vector<1x2xf32>
    %15 = arith.mulf %14, %13 : vector<1x2xf32>
    %16 = arith.addf %11, %15 : vector<1x2xf32>
    %c3 = arith.constant 3 : index
    %17 = memref.load %arg1[%c3] : memref<12xf32, #tpu.memory_space<smem>>
    %c3_7 = arith.constant 3 : index
    %c0_8 = arith.constant 0 : index
    %18 = vector.load %arg3[%c3_7, %c0_8] : memref<4x2xf32, #tpu.memory_space<vmem>>, vector<1x2xf32>
    %19 = vector.broadcast %17 : f32 to vector<1x2xf32>
    %20 = arith.mulf %19, %18 : vector<1x2xf32>
    %21 = arith.addf %16, %20 : vector<1x2xf32>
    %c0_9 = arith.constant 0 : index
    %c0_10 = arith.constant 0 : index
    %22 = vector.load %arg4[%c0_9, %c0_10] : memref<3x2xf32, #tpu.memory_space<vmem>>, vector<1x2xf32>
    tpu.vector_store %arg4[%c0_9, %c0_10], %21 {strides = array<i32>} : memref<3x2xf32, #tpu.memory_space<vmem>>, vector<1x2xf32>,
    %c1_11 = arith.constant 1 : index
    %23 = memref.load %arg2[%c1_11] : memref<3xf32, #tpu.memory_space<smem>>
    %24 = vector.broadcast %23 : f32 to vector<1x2xf32>
    %c4 = arith.constant 4 : index
    %25 = memref.load %arg1[%c4] : memref<12xf32, #tpu.memory_space<smem>>
    %c0_12 = arith.constant 0 : index
    %c0_13 = arith.constant 0 : index
    %26 = vector.load %arg3[%c0_12, %c0_13] : memref<4x2xf32, #tpu.memory_space<vmem>>, vector<1x2xf32>
    %27 = vector.broadcast %25 : f32 to vector<1x2xf32>
    %28 = arith.mulf %27, %26 : vector<1x2xf32>
    %29 = arith.addf %24, %28 : vector<1x2xf32>
    %c5 = arith.constant 5 : index
    %30 = memref.load %arg1[%c5] : memref<12xf32, #tpu.memory_space<smem>>
    %c1_14 = arith.constant 1 : index
    %c0_15 = arith.constant 0 : index
    %31 = vector.load %arg3[%c1_14, %c0_15] : memref<4x2xf32, #tpu.memory_space<vmem>>, vector<1x2xf32>
    %32 = vector.broadcast %30 : f32 to vector<1x2xf32>
    %33 = arith.mulf %32, %31 : vector<1x2xf32>
    %34 = arith.addf %29, %33 : vector<1x2xf32>
    %c6 = arith.constant 6 : index
    %35 = memref.load %arg1[%c6] : memref<12xf32, #tpu.memory_space<smem>>
    %c2_16 = arith.constant 2 : index
    %c0_17 = arith.constant 0 : index
    %36 = vector.load %arg3[%c2_16, %c0_17] : memref<4x2xf32, #tpu.memory_space<vmem>>, vector<1x2xf32>
    %37 = vector.broadcast %35 : f32 to vector<1x2xf32>
    %38 = arith.mulf %37, %36 : vector<1x2xf32>
    %39 = arith.addf %34, %38 : vector<1x2xf32>
    %c7 = arith.constant 7 : index
    %40 = memref.load %arg1[%c7] : memref<12xf32, #tpu.memory_space<smem>>
    %c3_18 = arith.constant 3 : index
    %c0_19 = arith.constant 0 : index
    %41 = vector.load %arg3[%c3_18, %c0_19] : memref<4x2xf32, #tpu.memory_space<vmem>>, vector<1x2xf32>
    %42 = vector.broadcast %40 : f32 to vector<1x2xf32>
    %43 = arith.mulf %42, %41 : vector<1x2xf32>
    %44 = arith.addf %39, %43 : vector<1x2xf32>
    %c1_20 = arith.constant 1 : index
    %c0_21 = arith.constant 0 : index
    %45 = vector.load %arg4[%c1_20, %c0_21] : memref<3x2xf32, #tpu.memory_space<vmem>>, vector<1x2xf32>
    tpu.vector_store %arg4[%c1_20, %c0_21], %44 {strides = array<i32>} : memref<3x2xf32, #tpu.memory_space<vmem>>, vector<1x2xf32>,
    %c2_22 = arith.constant 2 : index
    %46 = memref.load %arg2[%c2_22] : memref<3xf32, #tpu.memory_space<smem>>
    %47 = vector.broadcast %46 : f32 to vector<1x2xf32>
    %c8 = arith.constant 8 : index
    %48 = memref.load %arg1[%c8] : memref<12xf32, #tpu.memory_space<smem>>
    %c0_23 = arith.constant 0 : index
    %c0_24 = arith.constant 0 : index
    %49 = vector.load %arg3[%c0_23, %c0_24] : memref<4x2xf32, #tpu.memory_space<vmem>>, vector<1x2xf32>
    %50 = vector.broadcast %48 : f32 to vector<1x2xf32>
    %51 = arith.mulf %50, %49 : vector<1x2xf32>
    %52 = arith.addf %47, %51 : vector<1x2xf32>
    %c9 = arith.constant 9 : index
    %53 = memref.load %arg1[%c9] : memref<12xf32, #tpu.memory_space<smem>>
    %c1_25 = arith.constant 1 : index
    %c0_26 = arith.constant 0 : index
    %54 = vector.load %arg3[%c1_25, %c0_26] : memref<4x2xf32, #tpu.memory_space<vmem>>, vector<1x2xf32>
    %55 = vector.broadcast %53 : f32 to vector<1x2xf32>
    %56 = arith.mulf %55, %54 : vector<1x2xf32>
    %57 = arith.addf %52, %56 : vector<1x2xf32>
    %c10 = arith.constant 10 : index
    %58 = memref.load %arg1[%c10] : memref<12xf32, #tpu.memory_space<smem>>
    %c2_27 = arith.constant 2 : index
    %c0_28 = arith.constant 0 : index
    %59 = vector.load %arg3[%c2_27, %c0_28] : memref<4x2xf32, #tpu.memory_space<vmem>>, vector<1x2xf32>
    %60 = vector.broadcast %58 : f32 to vector<1x2xf32>
    %61 = arith.mulf %60, %59 : vector<1x2xf32>
    %62 = arith.addf %57, %61 : vector<1x2xf32>
    %c11 = arith.constant 11 : index
    %63 = memref.load %arg1[%c11] : memref<12xf32, #tpu.memory_space<smem>>
    %c3_29 = arith.constant 3 : index
    %c0_30 = arith.constant 0 : index
    %64 = vector.load %arg3[%c3_29, %c0_30] : memref<4x2xf32, #tpu.memory_space<vmem>>, vector<1x2xf32>
    %65 = vector.broadcast %63 : f32 to vector<1x2xf32>
    %66 = arith.mulf %65, %64 : vector<1x2xf32>
    %67 = arith.addf %62, %66 : vector<1x2xf32>
    %c2_31 = arith.constant 2 : index
    %c0_32 = arith.constant 0 : index
    %68 = vector.load %arg4[%c2_31, %c0_32] : memref<3x2xf32, #tpu.memory_space<vmem>>, vector<1x2xf32>
    tpu.vector_store %arg4[%c2_31, %c0_32], %67 {strides = array<i32>} : memref<3x2xf32, #tpu.memory_space<vmem>>, vector<1x2xf32>,
    return
  }
  func.func @transform_0(%arg0: i32) -> i32 {
    %c0_i32 = arith.constant 0 : i32
    %c0_i32_0 = arith.constant 0 : i32
    return %c0_i32 : i32
  }
  func.func @transform_1(%arg0: i32) -> i32 {
    %c0_i32 = arith.constant 0 : i32
    %c0_i32_0 = arith.constant 0 : i32
    return %c0_i32 : i32
  }
  func.func @transform_2(%arg0: i32) -> (i32, i32) {
    %c0_i32 = arith.constant 0 : i32
    %c0_i32_0 = arith.constant 0 : i32
    return %c0_i32, %arg0 : i32, i32
  }
  func.func @transform_3(%arg0: i32) -> (i32, i32) {
    %c0_i32 = arith.constant 0 : i32
    %c0_i32_0 = arith.constant 0 : i32
    return %c0_i32, %arg0 : i32, i32
  }
}

</mosaic_0001>

<bundles_post_ra>
// kernel: linear_forward_vpu.1
= control target key start
LH: loop header
LB: loop body
LE: loop exit
PB: predicated region body
PF: predicated region fallthrough
CT: control target
= control target key end

     0   :  { %8 = vsyncpa [#allocation3], 0  ;;  %s261_s0 = inlined_call_operand.vmem [shape: f32[12], index: 0, kind: input, shape index: {}]   ;;  %s262_s1 = inlined_call_operand.vmem [shape: f32[3], index: 1, kind: input, shape index: {}]   ;;  %s263_s2 = inlined_call_operand.vmem [shape: f32[4,2], index: 2, kind: input, shape index: {}]   ;;  %s264_s3 = inlined_call_operand.vmem [shape: f32[3,2], index: 3, kind: output, shape index: {}]  }
   0x1   :  { %s16_s14 = sshll.u32 %s261_s0, 4  ;;  %s17_s14 = int_to_ptr.vmem [resolvable:$true] %s16_s14 }
   0x2   :  { %9 = vsyncpa [#allocation5], 0  ;;  %s26_s17 = sshll.u32 %s262_s1, 4  ;;  %s130_s18 = scalar_lea.vmem %s17_s14, 16  ;;  %s27_s17 = int_to_ptr.vmem [resolvable:$true] %s26_s17 }
   0x3   :  { %p131_p0 = scmp.ne.s32.totalorder %s17_s14, %s130_s18  ;;  %p135_p1 = scmp.lt.s32.totalorder %s17_s14, %s17_s14 }
   0x4   :  { %p136_p2 = scmp.lt.s32.totalorder %s130_s18, %s130_s18 }
   0x6   :  { %p137_p3 = por %p136_p2, %p135_p1 }
   0x8   :  { %p138_p4 = pnand %p137_p3, %p131_p0 }
   0xa   :  { %141 = shalt.err (!%p138_p4)
}
   0xb   :  { %s158_s19 = smov [#allocation2]   ;;  %s142_s20 = scalar_lea.vmem %s27_s17, 16 }
   0xc   :  { %19 = dma.vmem_to_smem %s17_s14, 16, %s158_s19, [#allocation3]  }
   0xd   :  { %p143_p5 = scmp.ne.s32.totalorder %s27_s17, %s142_s20  ;;  %p147_p6 = scmp.lt.s32.totalorder %s27_s17, %s27_s17 }
   0xe   :  { %p148_p7 = scmp.lt.s32.totalorder %s142_s20, %s142_s20 }
  0x10   :  { %p149_p8 = por %p148_p7, %p147_p6 }
  0x12   :  { %p150_p9 = pnand %p149_p8, %p143_p5 }
  0x14   :  { %153 = shalt.err (!%p150_p9)
}
  0x15   :  { %s159_s0 = smov [#allocation4]  }
  0x16   :  { %29 = dma.vmem_to_smem %s27_s17, 16, %s159_s0, [#allocation5]  }
  0x17   :  { %154 = dma.done.wait [#allocation3], 16  }
  0x18   :  { %155 = vsyncadd [#allocation3], 4294967280 }
  0x19   :  { %156 = dma.done.wait [#allocation5], 16  }
  0x1a   :  { %157 = vsyncadd [#allocation5], 4294967280 }
  0x1b   :  { %38 = sfence }
  0x1c   :  { %s39_s1 = sld [smem:[#allocation4]]  ;;  %s115_s22 = sld [smem:[#allocation2 + $0x1]]  ;;  %v42_v0 = vld [vmem:[%s263_s2] sm:$0x1]  ;;  %v47_v1 = vld [vmem:[%s263_s2 + $0x1] sm:$0x1] }
  0x1d   :  { %s41_s21 = sld [smem:[#allocation2]]  ;;  %s116_s23 = sld [smem:[#allocation2 + $0x2]]  ;;  %v52_v4 = vld [vmem:[%s263_s2 + $0x2] sm:$0x1]  ;;  %v57_v8 = vld [vmem:[%s263_s2 + $0x3] sm:$0x1] }
  0x1e   :  { %s186_s24 = sld [smem:[#allocation2 + $0x3]]  ;;  %s188_s25 = sld [smem:[#allocation4 + $0x1]]  ;;  %v66_v9 = vld [vmem:[%s263_s2] sm:$0x1]  ;;  %v71_v12 = vld [vmem:[%s263_s2 + $0x1] sm:$0x1] }
  0x1f   :  { %s119_s26 = sld [smem:[#allocation2 + $0x4]]  ;;  %s120_s29 = sld [smem:[#allocation2 + $0x5]]  ;;  %v76_v17 = vld [vmem:[%s263_s2 + $0x2] sm:$0x1]  ;;  %v81_v18 = vld [vmem:[%s263_s2 + $0x3] sm:$0x1] }
  0x20   :  { %s196_s5 = sld [smem:[#allocation2 + $0x6]]  ;;  %s198_s6 = sld [smem:[#allocation2 + $0x7]]  ;;  %v89_v26 = vld [vmem:[%s263_s2] sm:$0x1]  ;;  %v94_v27 = vld [vmem:[%s263_s2 + $0x1] sm:$0x1] }
  0x21   :  { %s203_s9 = sld [smem:[#allocation4 + $0x2]]  ;;  %s205_s10 = sld [smem:[#allocation2 + $0x8]]  ;;  %vm61_vm0 = vcmask 8192   ;;  %v99_v35 = vld [vmem:[%s263_s2 + $0x2] sm:$0x1] }
  0x22   :  { %v40_v2 = vstv %s39_s1  ;;  %v48_v6 = vstv %s115_s22  ;;  %s213_s15 = sld [smem:[#allocation2 + $0x9]]  ;;  %s219_s18 = sld [smem:[#allocation2 + $0xa]]  ;;  %v104_v41 = vld [vmem:[%s263_s2 + $0x3] sm:$0x1] }
  0x23   :  { %v43_v3 = vstv %s41_s21  ;;  %v53_v7 = vstv %s116_s23  ;;  %v49_v10 = vmul.f32 %v48_v6, %v47_v1  ;;  %s221_s19 = sld [smem:[#allocation2 + $0xb]] }
  0x24   :  { %v44_v5 = vmul.f32 %v43_v3, %v42_v0  ;;  %v58_v11 = vstv %s186_s24  ;;  %v54_v14 = vmul.f32 %v53_v7, %v52_v4  ;;  %v64_v15 = vstv %s188_s25 }
  0x25   :  { %v67_v16 = vstv %s119_s26  ;;  %v59_v19 = vmul.f32 %v58_v11, %v57_v8  ;;  %v72_v21 = vstv %s120_s29 }
  0x26   :  { %v45_v13 = vadd.f32 %v44_v5, %v40_v2  ;;  %v68_v20 = vmul.f32 %v67_v16, %v66_v9  ;;  %v73_v23 = vmul.f32 %v72_v21, %v71_v12  ;;  %v77_v24 = vstv %s196_s5 }
  0x27   :  { %v82_v25 = vstv %s198_s6  ;;  %v78_v29 = vmul.f32 %v77_v24, %v76_v17  ;;  %v87_v32 = vstv %s203_s9  ;;  %v90_v33 = vstv %s205_s10 }
  0x28   :  { %v50_v22 = vadd.f32 %v49_v10, %v45_v13  ;;  %v69_v28 = vadd.f32 %v68_v20, %v64_v15  ;;  %v83_v30 = vmul.f32 %v82_v25, %v81_v18  ;;  %v95_v34 = vstv %s213_s15 }
  0x29   :  { %v91_v37 = vmul.f32 %v90_v33, %v89_v26  ;;  %v96_v38 = vmul.f32 %v95_v34, %v94_v27  ;;  %v100_v39 = vstv %s219_s18  ;;  %v105_v42 = vstv %s221_s19 }
  0x2a   :  { %v55_v31 = vadd.f32 %v54_v14, %v50_v22  ;;  %v74_v36 = vadd.f32 %v73_v23, %v69_v28  ;;  %v101_v45 = vmul.f32 %v100_v39, %v99_v35  ;;  %v106_v48 = vmul.f32 %v105_v42, %v104_v41 }
  0x2b   :  { %v92_v44 = vadd.f32 %v91_v37, %v87_v32 }
  0x2c   :  { %v60_v40 = vadd.f32 %v59_v19, %v55_v31  ;;  %v79_v43 = vadd.f32 %v78_v29, %v74_v36 }
  0x2d   :  { %v97_v47 = vadd.f32 %v96_v38, %v92_v44 }
  0x2e   :  { %62 = vst.msk [vmem:[%s264_s3] sm:$0x1] %vm61_vm0, %v60_v40  ;;  %v84_v46 = vadd.f32 %v83_v30, %v79_v43 }
  0x2f   :  { %v102_v49 = vadd.f32 %v101_v45, %v97_v47 }
  0x30   :  { %85 = vst.msk [vmem:[%s264_s3 + $0x1] sm:$0x1] %vm61_vm0, %v84_v46 }
  0x31   :  { %v107_v50 = vadd.f32 %v106_v48, %v102_v49 }
  0x33   :  { %108 = vst.msk [vmem:[%s264_s3 + $0x2] sm:$0x1] %vm61_vm0, %v107_v50 }
  0x34   :  { %113 = vsyncpa [#allocation3], 1 }
  0x35   :  { %114 = vsyncpa [#allocation5], 1 }

</bundles_post_ra>
